<compile_context>
chip_gen: v7x
topology: tpu7x:2x2x1
jax: 0.10.0
libtpu: 0.0.40
codegen_flags: <defaults>
</compile_context>

<pallas_src>
import jax
import jax.numpy as jnp
from jax.experimental import pallas as pl
from jax.experimental.pallas import tpu as pltpu

block_size = 64     # max sequence length for the causal mask (as in the module)
n_embd = 384
head_size = 64


def head_kernel(x_ref, w_ref, o_ref):
    # x_ref: (Bb, T, C) in matmul dtype; w_ref: (C, 3H) fused [Wq | Wk | Wv];
    # o_ref: (Bb, T, H).
    Bb, T, C = x_ref.shape
    H = w_ref.shape[1] // 3
    mmdt = x_ref.dtype                     # dtype fed to the MXU (bf16 or f32)

    # One fused projection matmul: M = Bb*T rows, N = 3H columns, f32 accumulation.
    # (Bb, T, C) -> (Bb*T, C) merges leading dims only: layout no-op (C stays on lanes).
    x2d = x_ref[...].reshape(Bb * T, C)
    qkv = jnp.dot(x2d, w_ref[...], preferred_element_type=jnp.float32)   # (Bb*T, 3H) f32
    qkv = qkv.reshape(Bb, T, 3 * H)

    # Fold the 1/sqrt(H) scale into q (smaller than the (T, T) score matrix).
    scale = H ** -0.5
    q = qkv[:, :, 0 * H:1 * H] * scale
    k = qkv[:, :, 1 * H:2 * H]
    v = qkv[:, :, 2 * H:3 * H]

    # Scaled attention scores: batched contraction over the head dim (no explicit k.T).
    wei = jnp.einsum("bqd,bkd->bqk", q.astype(mmdt), k.astype(mmdt),
                     preferred_element_type=jnp.float32)                  # (Bb, T, T) f32

    # Causal mask (tril[:T, :T]): col > row -> -inf.
    row = jax.lax.broadcasted_iota(jnp.int32, (T, T), 0)
    col = jax.lax.broadcasted_iota(jnp.int32, (T, T), 1)
    wei = jnp.where((col <= row)[None, :, :], wei, -jnp.inf)

    # Numerically-stable softmax in f32; denominator via the EUP approximate reciprocal.
    m = jnp.max(wei, axis=-1, keepdims=True)
    e = jnp.exp(wei - m)
    s = jnp.sum(e, axis=-1, keepdims=True)
    p = e * pl.reciprocal(s, approx=True)

    # dropout(p=0.2) is identity in eval mode.
    out = jnp.einsum("bqk,bkd->bqd", p.astype(mmdt), v.astype(mmdt),
                     preferred_element_type=jnp.float32)                  # (Bb, T, H) f32
    o_ref[...] = out.astype(o_ref.dtype)


def head_forward(x, wq, wk, wv, *, batch_block=None, matmul_dtype=jnp.bfloat16):
    """One-head causal self-attention (eval-mode forward of the PyTorch `Head`).

    x: (B, T, C); wq/wk/wv: (C, H)  (nn.Linear weights, pre-transposed).
    matmul_dtype: dtype fed to the MXU (bf16 recommended on v5e/v6e/v7x); accumulation
    and all softmax math stay in f32.  Pass jnp.float32 for an exact-f32 path.
    """
    B, T, C = x.shape
    H = wq.shape[1]
    assert wq.shape == wk.shape == wv.shape == (C, H)
    assert T <= block_size

    if batch_block is None:
        # Biggest divisor of B that keeps >= 2 grid steps (v7x: shard batch across the
        # two TensorCores), capped at 8 so blocks stay small in VMEM.
        cap = min(8, B // 2) if B > 1 else 1
        batch_block = max(d for d in range(1, max(cap, 1) + 1) if B % d == 0)
    if T % 8 != 0:
        # Keep the in-kernel (Bb, T, C) -> (Bb*T, C) reshape sublane-tile aligned.
        batch_block = 1
    assert B % batch_block == 0, "batch_block must divide B"

    # Fuse the three projection weights into one (C, 3H) matrix: [Wq | Wk | Wv].
    w_qkv = jnp.concatenate([wq, wk, wv], axis=1).astype(matmul_dtype)
    x_in = x.astype(matmul_dtype)

    return pl.pallas_call(
        head_kernel,
        out_shape=jax.ShapeDtypeStruct((B, T, H), x.dtype),
        grid_spec=pltpu.PrefetchScalarGridSpec(
            num_scalar_prefetch=0,
            grid=(B // batch_block,),
            in_specs=[
                pl.BlockSpec((batch_block, T, C), lambda b: (b, 0, 0)),   # x block
                pl.BlockSpec((C, 3 * H), lambda b: (0, 0)),               # fused Wqkv (resident)
            ],
            out_specs=pl.BlockSpec((batch_block, T, H), lambda b: (b, 0, 0)),
        ),
        compiler_params=pltpu.CompilerParams(
            dimension_semantics=("parallel",),
        ),
    )(x_in, w_qkv)


def reference_head(x, wq, wk, wv):
    """Pure-JAX reference matching the PyTorch forward (eval mode), f32."""
    k = x @ wk
    q = x @ wq
    v = x @ wv
    wei = (q @ jnp.swapaxes(k, -2, -1)) * (k.shape[-1] ** -0.5)
    T = x.shape[1]
    tril = jnp.tril(jnp.ones((T, T), dtype=bool))
    wei = jnp.where(tril, wei, -jnp.inf)
    wei = jax.nn.softmax(wei, axis=-1)
    return wei @ v


if __name__ == "__main__":
    key = jax.random.PRNGKey(0)
    kx, kk, kq, kv = jax.random.split(key, 4)

    B, T = 2, 8  # small sequence; C = n_embd = 384, H = head_size = 64
    x = jax.random.normal(kx, (B, T, n_embd), dtype=jnp.float32)
    # nn.Linear(n_embd, head_size, bias=False) weight is (H, C); stored transposed (C, H).
    bound = 1.0 / (n_embd ** 0.5)
    wk = jax.random.uniform(kk, (n_embd, head_size), jnp.float32, -bound, bound)
    wq = jax.random.uniform(kq, (n_embd, head_size), jnp.float32, -bound, bound)
    wv = jax.random.uniform(kv, (n_embd, head_size), jnp.float32, -bound, bound)

    ref = reference_head(x, wq, wk, wv)

    # Exact-precision path (f32 MXU operands) — tight check.
    out_f32 = jax.block_until_ready(
        head_forward(x, wq, wk, wv, matmul_dtype=jnp.float32))
    assert out_f32.shape == (B, T, head_size)
    assert jnp.allclose(out_f32, ref, atol=5e-3, rtol=5e-3), "f32 path mismatch vs reference"

    # Default fast path (bf16 MXU operands, f32 accumulation / softmax).
    out = jax.block_until_ready(head_forward(x, wq, wk, wv))
    assert out.shape == (B, T, head_size)
    assert jnp.allclose(out, ref, atol=3e-2, rtol=3e-2), "bf16 path mismatch vs reference"

    print("KERNEL_OK")
</pallas_src>

<mosaic_0001>
module attributes {stable_mosaic.version = 11 : i64} {
  func.func @head_kernel(%arg0: i32, %arg1: memref<1x8x384xf32, #tpu.memory_space<vmem>>, %arg2: memref<384x192xf32, #tpu.memory_space<vmem>>, %arg3: memref<1x8x64xf32, #tpu.memory_space<vmem>>) attributes {dimension_semantics = [#tpu.dimension_semantics<parallel>], iteration_bounds = array<i64: 2>, scalar_prefetch = 0 : i64, scratch_operands = 0 : i64, tpu.core_type = #tpu.core_type<tc>, window_params = [{transform_indices = @transform_0, window_bounds = array<i64: 1, 8, 384>}, {pipeline_mode = #tpu.pipeline_mode<synchronous>, transform_indices = @transform_1, window_bounds = array<i64: 384, 192>}, {transform_indices = @transform_2, window_bounds = array<i64: 1, 8, 64>}]} {
    %c0 = arith.constant 0 : index
    %c0_0 = arith.constant 0 : index
    %c0_1 = arith.constant 0 : index
    %0 = vector.load %arg1[%c0, %c0_0, %c0_1] : memref<1x8x384xf32, #tpu.memory_space<vmem>>, vector<1x8x384xf32>
    %1 = vector.shape_cast %0 : vector<1x8x384xf32> to vector<8x384xf32>
    %c0_2 = arith.constant 0 : index
    %c0_3 = arith.constant 0 : index
    %2 = vector.load %arg2[%c0_2, %c0_3] : memref<384x192xf32, #tpu.memory_space<vmem>>, vector<384x192xf32>
    %cst = arith.constant dense<0.000000e+00> : vector<8x192xf32>
    %3 = tpu.matmul %1, %2, %cst {dimension_numbers = #tpu.dot_dimension_numbers<[1], [0], [0], [1], [0, 0, 1, 1], [], []>} : vector<8x384xf32>, vector<384x192xf32>, vector<8x192xf32> -> vector<8x192xf32>
    %4 = vector.shape_cast %3 : vector<8x192xf32> to vector<1x8x192xf32>
    %5 = vector.extract_strided_slice %4 {offsets = [0, 0, 0], sizes = [1, 8, 64], strides = [1, 1, 1]} : vector<1x8x192xf32> to vector<1x8x64xf32>
    %cst_4 = arith.constant 1.250000e-01 : f32
    %6 = vector.broadcast %cst_4 : f32 to vector<1x8x64xf32>
    %7 = arith.mulf %5, %6 : vector<1x8x64xf32>
    %8 = vector.extract_strided_slice %4 {offsets = [0, 0, 64], sizes = [1, 8, 64], strides = [1, 1, 1]} : vector<1x8x192xf32> to vector<1x8x64xf32>
    %9 = vector.extract_strided_slice %4 {offsets = [0, 0, 128], sizes = [1, 8, 64], strides = [1, 1, 1]} : vector<1x8x192xf32> to vector<1x8x64xf32>
    "tpu.trace_start"() <{level = 10 : i32, message = "bqd,bkd->bqk"}> : () -> ()
    %cst_5 = arith.constant dense<0.000000e+00> : vector<1x8x8xf32>
    %10 = tpu.matmul %7, %8, %cst_5 {dimension_numbers = #tpu.dot_dimension_numbers<[2], [2], [1], [1], [0, 0, 0, 1, 1, 1], [0], [0]>} : vector<1x8x64xf32>, vector<1x8x64xf32>, vector<1x8x8xf32> -> vector<1x8x8xf32>
    "tpu.trace_stop"() : () -> ()
    %11 = tpu.iota {dimensions = array<i32: 0>} : vector<8x8xi32>
    %12 = tpu.iota {dimensions = array<i32: 1>} : vector<8x8xi32>
    %13 = arith.cmpi sle, %12, %11 : vector<8x8xi32>
    %14 = vector.shape_cast %13 : vector<8x8xi1> to vector<1x8x8xi1>
    %cst_6 = arith.constant 0xFF800000 : f32
    %15 = vector.broadcast %cst_6 : f32 to vector<1x8x8xf32>
    %16 = arith.select %14, %10, %15 : vector<1x8x8xi1>, vector<1x8x8xf32>
    %cst_7 = arith.constant dense<0xFF800000> : vector<1x8xf32>
    %17 = vector.multi_reduction <maximumf>, %16, %cst_7 [2] : vector<1x8x8xf32> to vector<1x8xf32>
    %18 = vector.shape_cast %17 : vector<1x8xf32> to vector<1x8x1xf32>
    %19 = vector.broadcast %18 : vector<1x8x1xf32> to vector<1x8x8xf32>
    %20 = arith.subf %16, %19 : vector<1x8x8xf32>
    %21 = math.exp %20 : vector<1x8x8xf32>
    %cst_8 = arith.constant dense<0.000000e+00> : vector<1x8xf32>
    %22 = vector.multi_reduction <add>, %21, %cst_8 [2] : vector<1x8x8xf32> to vector<1x8xf32>
    %23 = vector.shape_cast %22 : vector<1x8xf32> to vector<1x8x1xf32>
    %24 = tpu.reciprocal %23 {approx = true} : vector<1x8x1xf32> -> vector<1x8x1xf32>
    %25 = vector.broadcast %24 : vector<1x8x1xf32> to vector<1x8x8xf32>
    %26 = arith.mulf %21, %25 : vector<1x8x8xf32>
    "tpu.trace_start"() <{level = 10 : i32, message = "bqk,bkd->bqd"}> : () -> ()
    %cst_9 = arith.constant dense<0.000000e+00> : vector<1x8x64xf32>
    %27 = tpu.matmul %26, %9, %cst_9 {dimension_numbers = #tpu.dot_dimension_numbers<[2], [1], [1], [2], [0, 0, 0, 1, 1, 2], [0], [0]>} : vector<1x8x8xf32>, vector<1x8x64xf32>, vector<1x8x64xf32> -> vector<1x8x64xf32>
    "tpu.trace_stop"() : () -> ()
    %c0_10 = arith.constant 0 : index
    %c0_11 = arith.constant 0 : index
    %c0_12 = arith.constant 0 : index
    %28 = vector.load %arg3[%c0_10, %c0_11, %c0_12] : memref<1x8x64xf32, #tpu.memory_space<vmem>>, vector<1x8x64xf32>
    tpu.vector_store %arg3[%c0_10, %c0_11, %c0_12], %27 {strides = array<i32>} : memref<1x8x64xf32, #tpu.memory_space<vmem>>, vector<1x8x64xf32>,
    return
  }
  func.func @transform_0(%arg0: i32) -> (i32, i32, i32) {
    %c0_i32 = arith.constant 0 : i32
    %c0_i32_0 = arith.constant 0 : i32
    %c0_i32_1 = arith.constant 0 : i32
    return %arg0, %c0_i32, %c0_i32_0 : i32, i32, i32
  }
  func.func @transform_1(%arg0: i32) -> (i32, i32) {
    %c0_i32 = arith.constant 0 : i32
    %c0_i32_0 = arith.constant 0 : i32
    %c0_i32_1 = arith.constant 0 : i32
    return %c0_i32, %c0_i32_0 : i32, i32
  }
  func.func @transform_2(%arg0: i32) -> (i32, i32, i32) {
    %c0_i32 = arith.constant 0 : i32
    %c0_i32_0 = arith.constant 0 : i32
    %c0_i32_1 = arith.constant 0 : i32
    return %arg0, %c0_i32, %c0_i32_0 : i32, i32, i32
  }
}

</mosaic_0001>

<bundles_post_ra>
// kernel: tpu_custom_call.1
= control target key start
LH: loop header
LB: loop body
LE: loop exit
PB: predicated region body
PF: predicated region fallthrough
CT: control target
= control target key end

     0   :  { %7 = vsyncpa [#allocation3], 0  ;;  %s1292_s0 = inlined_call_operand.vmem [shape: f32[2,8,384], index: 0, kind: input, shape index: {}]   ;;  %s1293_s1 = inlined_call_operand.vmem [shape: f32[384,192], index: 1, kind: input, shape index: {}]   ;;  %s1294_s2 = inlined_call_operand.hbm [shape: f32[2,8,64], index: 2, kind: output, shape index: {}]  }
   0x1   :  { %9 = vsyncpa [#allocation3 + $0x1], 0  ;;  %s883_s9 = smov 0   ;;  %s885_s10 = smov 0  }
   0x2   :  { %s887_s11 = smov 0   ;;  %s889_s12 = smov 0  }
   0x3 LB: > { %s904_s13 = sadd.s32 4294967295, %s862_s12   ;;  %s628_s14 = sadd.s32 4294967294, %s862_s12   ;;  %s862_s12 = sphi %s889_s12, %s1300_s12   ;;  %s858_s11 = sphi %s887_s11, %s1299_s11   ;;  %s854_s10 = sphi %s885_s10, %s1298_s10   ;;  %s850_s9 = sphi %s883_s9, %s1297_s9  }
   0x4   : > { %s908_s15 = sadd.s32 1, %s862_s12   ;;  %s69_s16 = sadd.s32 1, %s858_s11 }
   0x5   : > { %s66_s17 = ssub.s32 %s862_s12, %s908_s15  ;;  %p79_p0 = scmp.ne.s32.totalorder %s858_s11, %s854_s10 }
   0x6   : > { %p67_p1 = scmp.eq.s32.totalorder %s66_s17, 0  ;;  %p80_p2 = scmp.eq.s32.totalorder %s904_s13, 1 }
   0x7   : > { %p85_p3 = scmp.ne.s32.totalorder %s854_s10, %s850_s9  ;;  %p86_p4 = scmp.eq.s32.totalorder %s628_s14, 1 }
   0x8   : > { %s919_s18 = scalar_select %p67_p1, %s858_s11, %s69_s16  }
   0x9   : > { %p921_p5 = por %p80_p2, %p79_p0  ;;  %p925_p6 = por %p86_p4, %p85_p3 }
   0xa   : > { %p631_p7 = scmp.ge.s32.totalorder %s862_s12, 1  ;;  %p115_p8 = scmp.lt.s32.totalorder %s862_s12, 3 }
   0xc   : > { %p116_p9 = pnand %p631_p7, %p115_p8 }
   0xd   : > { %v146_v0 = vld [vmem:[%s1293_s1 + $0x8] sm:$0xff] (!%p116_p9)  ;;  %v148_v1 = vld [vmem:[%s1293_s1 + $0x18] sm:$0xff] (!%p116_p9)  ;;  %v145_v2 = vld [vmem:[%s1293_s1] sm:$0xff] (!%p116_p9)  ;;  %v864_v7 = vmov (!%p116_p9), 0.0   ;;  %p137_p10 = scmp.lt.s32.totalorder (!%p116_p9), %s904_s13, 1  ;;  %vm865_vm0 = vmmov (!%p116_p9), 0  }
   0xe   : > { %119 = sbr.rel (%p116_p9) target bundleno = 1165 (0x48d), region = 28  ;;  %v655_v3 = vpack.c.bf16 (!%p116_p9), %v148_v1, %v146_v0  ;;  %v147_v4 = vld [vmem:[%s1293_s1 + $0x10] sm:$0xff] (!%p116_p9)  ;;  %v150_v5 = vld [vmem:[%s1293_s1 + $0x28] sm:$0xff] (!%p116_p9)  ;;  %v152_v6 = vld [vmem:[%s1293_s1 + $0x38] sm:$0xff] (!%p116_p9)  ;;  %376 = vmatprep.mubr.f32.mxu1 (!%p116_p9), %v864_v7  ;;  %s866_s3 = smov (!%p116_p9), 64   ;;  %vm387_vm1 = vcmask (!%p116_p9), 523264  }
   0xf   : > { %v657_v8 = vpack.c.bf16 (!%p116_p9), %v147_v4, %v145_v2  ;;  %v659_v9 = vpack.c.bf16 (!%p116_p9), %v152_v6, %v150_v5  ;;  %v149_v10 = vld [vmem:[%s1293_s1 + $0x20] sm:$0xff] (!%p116_p9)  ;;  %v151_v11 = vld [vmem:[%s1293_s1 + $0x30] sm:$0xff] (!%p116_p9)  ;;  %v154_v12 = vld [vmem:[%s1293_s1 + $0x48] sm:$0xff] (!%p116_p9)  ;;  %vm469_vm3 = vcmask (!%p116_p9), 64512   ;;  %s638_s5 = sshll.u32 (!%p116_p9), %s904_s13, 7 }
  0x10   : > { %656 = vmatprep.subr.bf16.mxu0 (!%p116_p9), %v655_v3  ;;  %v156_v13 = vld [vmem:[%s1293_s1 + $0x58] sm:$0xff] (!%p116_p9)  ;;  %v661_v14 = vpack.c.bf16 (!%p116_p9), %v151_v11, %v149_v10  ;;  %v153_v16 = vld [vmem:[%s1293_s1 + $0x40] sm:$0xff] (!%p116_p9)  ;;  %v155_v17 = vld [vmem:[%s1293_s1 + $0x50] sm:$0xff] (!%p116_p9)  ;;  %s1249_s22 = scalar_lea.hbm (!%p116_p9), %s1294_s2, %s638_s5 }
  0x11   : > { %658 = vmatpush1.bf16.msra.mxu0 (!%p116_p9), %v657_v8  ;;  %v663_v15 = vpack.c.bf16 (!%p116_p9), %v156_v13, %v154_v12  ;;  %v158_v18 = vld [vmem:[%s1293_s1 + $0x68] sm:$0xff] (!%p116_p9)  ;;  %v160_v19 = vld [vmem:[%s1293_s1 + $0x78] sm:$0xff] (!%p116_p9)  ;;  %v665_v20 = vpack.c.bf16 (!%p116_p9), %v155_v17, %v153_v16  ;;  %v157_v22 = vld [vmem:[%s1293_s1 + $0x60] sm:$0xff] (!%p116_p9) }
  0x12   : > { %660 = vmatprep.subr.bf16.mxu0 (!%p116_p9), %v659_v9  ;;  %v667_v21 = vpack.c.bf16 (!%p116_p9), %v160_v19, %v158_v18  ;;  %v159_v23 = vld [vmem:[%s1293_s1 + $0x70] sm:$0xff] (!%p116_p9)  ;;  %v162_v24 = vld [vmem:[%s1293_s1 + $0x88] sm:$0xff] (!%p116_p9)  ;;  %v164_v25 = vld [vmem:[%s1293_s1 + $0x98] sm:$0xff] (!%p116_p9) }
  0x13   : > { %v210_v26 = vld [vmem:[%s1293_s1 + $0x208] sm:$0xff] (!%p116_p9)  ;;  %v212_v27 = vld [vmem:[%s1293_s1 + $0x218] sm:$0xff] (!%p116_p9)  ;;  %v669_v28 = vpack.c.bf16 (!%p116_p9), %v159_v23, %v157_v22  ;;  %v161_v29 = vld [vmem:[%s1293_s1 + $0x80] sm:$0xff] (!%p116_p9)  ;;  %v671_v33 = vpack.c.bf16 (!%p116_p9), %v164_v25, %v162_v24 }
  0x14   : > { %v719_v30 = vpack.c.bf16 (!%p116_p9), %v212_v27, %v210_v26  ;;  %v209_v31 = vld [vmem:[%s1293_s1 + $0x200] sm:$0xff] (!%p116_p9)  ;;  %v211_v32 = vld [vmem:[%s1293_s1 + $0x210] sm:$0xff] (!%p116_p9)  ;;  %v214_v36 = vld [vmem:[%s1293_s1 + $0x228] sm:$0xff] (!%p116_p9) }
  0x15   : > { %662 = vmatpush1.bf16.msra.mxu0 %v661_v14  ;;  %v163_v34 = vld [vmem:[%s1293_s1 + $0x90] sm:$0xff]  ;;  %v721_v35 = vpack.c.bf16 %v211_v32, %v209_v31  ;;  %v216_v37 = vld [vmem:[%s1293_s1 + $0x238] sm:$0xff]  ;;  %v166_v38 = vld [vmem:[%s1293_s1 + $0xa8] sm:$0xff]  ;;  %s1074_s14 = scalar_select %p137_p10, %s904_s13, 1 }
  0x16   : > { %664 = vmatprep.subr.bf16.mxu0 %v663_v15  ;;  %v168_v39 = vld [vmem:[%s1293_s1 + $0xb8] sm:$0xff]  ;;  %720 = vmatprep.subr.bf16.mxu1 %v719_v30  ;;  %v723_v40 = vpack.c.bf16 %v216_v37, %v214_v36  ;;  %v213_v41 = vld [vmem:[%s1293_s1 + $0x220] sm:$0xff]  ;;  %v215_v42 = vld [vmem:[%s1293_s1 + $0x230] sm:$0xff]  ;;  %v673_v43 = vpack.c.bf16 %v163_v34, %v161_v29  ;;  %s867_s13 = smov [#allocation2]  }
  0x17   : > { %722 = vmatpush1.bf16.msra.mxu1 %v721_v35  ;;  %v165_v44 = vld [vmem:[%s1293_s1 + $0xa0] sm:$0xff]  ;;  %v725_v45 = vpack.c.bf16 %v215_v42, %v213_v41  ;;  %v218_v46 = vld [vmem:[%s1293_s1 + $0x248] sm:$0xff]  ;;  %v220_v47 = vld [vmem:[%s1293_s1 + $0x258] sm:$0xff]  ;;  %v675_v48 = vpack.c.bf16 %v168_v39, %v166_v38  ;;  %s753_s7 = smul.u32 24, %s1074_s14 }
  0x18   : > { %724 = vmatprep.subr.bf16.mxu1 %v723_v40  ;;  %v167_v49 = vld [vmem:[%s1293_s1 + $0xb0] sm:$0xff]  ;;  %v727_v50 = vpack.c.bf16 %v220_v47, %v218_v46  ;;  %v217_v51 = vld [vmem:[%s1293_s1 + $0x240] sm:$0xff]  ;;  %v170_v53 = vld [vmem:[%s1293_s1 + $0xc8] sm:$0xff] }
  0x19   : > { %666 = vmatpush1.bf16.msra.mxu0 %v665_v20  ;;  %v219_v52 = vld [vmem:[%s1293_s1 + $0x250] sm:$0xff]  ;;  %v172_v54 = vld [vmem:[%s1293_s1 + $0xd8] sm:$0xff]  ;;  %v222_v55 = vld [vmem:[%s1293_s1 + $0x268] sm:$0xff]  ;;  %v677_v58 = vpack.c.bf16 %v167_v49, %v165_v44  ;;  %s1128_s8 = scalar_lea.vmem %s1292_s0, %s753_s7  ;;  %s804_s7 = sshll.u32 %s867_s13, 4  ;;  %s805_s7 = int_to_ptr.vmem [resolvable:$false] %s804_s7 }
  0x1a   : > { %668 = vmatprep.subr.bf16.mxu0 %v667_v21  ;;  %v729_v56 = vpack.c.bf16 %v219_v52, %v217_v51  ;;  %v224_v57 = vld [vmem:[%s1293_s1 + $0x278] sm:$0xff]  ;;  %v169_v59 = vld [vmem:[%s1293_s1 + $0xc0] sm:$0xff]  ;;  %v223_v62 = vld [vmem:[%s1293_s1 + $0x270] sm:$0xff]  ;;  %v679_v63 = vpack.c.bf16 %v172_v54, %v170_v53  ;;  %s806_s14 = scalar_lea.vmem %s805_s7, 256 }
  0x1b   : > { %726 = vmatpush1.bf16.msra.mxu1 %v725_v45  ;;  %v731_v60 = vpack.c.bf16 %v224_v57, %v222_v55  ;;  %v221_v61 = vld [vmem:[%s1293_s1 + $0x260] sm:$0xff]  ;;  %v171_v0 = vld [vmem:[%s1293_s1 + $0xd0] sm:$0xff]  ;;  %v226_v1 = vld [vmem:[%s1293_s1 + $0x288] sm:$0xff] }
  0x1c   : > { %728 = vmatprep.subr.bf16.mxu1 %v727_v50  ;;  %v228_v2 = vld [vmem:[%s1293_s1 + $0x298] sm:$0xff]  ;;  %v174_v3 = vld [vmem:[%s1293_s1 + $0xe8] sm:$0xff]  ;;  %v733_v5 = vpack.c.bf16 %v223_v62, %v221_v61  ;;  %v681_v6 = vpack.c.bf16 %v171_v0, %v169_v59  ;;  %v173_v8 = vld [vmem:[%s1293_s1 + $0xe0] sm:$0xff] }
  0x1d   : > { %670 = vmatpush1.bf16.msra.mxu0 %v669_v28  ;;  %v176_v4 = vld [vmem:[%s1293_s1 + $0xf8] sm:$0xff]  ;;  %v735_v9 = vpack.c.bf16 %v228_v2, %v226_v1  ;;  %v225_v10 = vld [vmem:[%s1293_s1 + $0x280] sm:$0xff]  ;;  %v227_v11 = vld [vmem:[%s1293_s1 + $0x290] sm:$0xff] }
  0x1e   : > { %672 = vmatprep.subr.bf16.mxu0 %v671_v33  ;;  %v683_v12 = vpack.c.bf16 %v176_v4, %v174_v3  ;;  %v175_v13 = vld [vmem:[%s1293_s1 + $0xf0] sm:$0xff]  ;;  %v230_v14 = vld [vmem:[%s1293_s1 + $0x2a8] sm:$0xff]  ;;  %v232_v15 = vld [vmem:[%s1293_s1 + $0x2b8] sm:$0xff]  ;;  %v737_v18 = vpack.c.bf16 %v227_v11, %v225_v10 }
  0x1f   : > { %730 = vmatpush1.bf16.msra.mxu1 %v729_v56  ;;  %v178_v16 = vld [vmem:[%s1293_s1 + $0x108] sm:$0xff]  ;;  %v180_v17 = vld [vmem:[%s1293_s1 + $0x118] sm:$0xff]  ;;  %v685_v19 = vpack.c.bf16 %v175_v13, %v173_v8  ;;  %v177_v20 = vld [vmem:[%s1293_s1 + $0x100] sm:$0xff]  ;;  %v739_v21 = vpack.c.bf16 %v232_v15, %v230_v14 }
  0x20   : > { %732 = vmatprep.subr.bf16.mxu1 %v731_v60  ;;  %v229_v22 = vld [vmem:[%s1293_s1 + $0x2a0] sm:$0xff]  ;;  %v231_v23 = vld [vmem:[%s1293_s1 + $0x2b0] sm:$0xff]  ;;  %v687_v24 = vpack.c.bf16 %v180_v17, %v178_v16  ;;  %v234_v26 = vld [vmem:[%s1293_s1 + $0x2c8] sm:$0xff] }
  0x21   : > { %674 = vmatpush1.bf16.msra.mxu0 %v673_v43  ;;  %v179_v25 = vld [vmem:[%s1293_s1 + $0x110] sm:$0xff]  ;;  %v236_v27 = vld [vmem:[%s1293_s1 + $0x2d8] sm:$0xff]  ;;  %v182_v28 = vld [vmem:[%s1293_s1 + $0x128] sm:$0xff]  ;;  %v741_v31 = vpack.c.bf16 %v231_v23, %v229_v22 }
  0x22   : > { %676 = vmatprep.subr.bf16.mxu0 %v675_v48  ;;  %v184_v29 = vld [vmem:[%s1293_s1 + $0x138] sm:$0xff]  ;;  %v181_v30 = vld [vmem:[%s1293_s1 + $0x120] sm:$0xff]  ;;  %v689_v32 = vpack.c.bf16 %v179_v25, %v177_v20  ;;  %v743_v33 = vpack.c.bf16 %v236_v27, %v234_v26  ;;  %v235_v35 = vld [vmem:[%s1293_s1 + $0x2d0] sm:$0xff] }
  0x23   : > { %734 = vmatpush1.bf16.msra.mxu1 %v733_v5  ;;  %v233_v34 = vld [vmem:[%s1293_s1 + $0x2c0] sm:$0xff]  ;;  %v143_v36 = vld [vmem:[%s1128_s8 + $0x8] sm:$0xff]  ;;  %v691_v37 = vpack.c.bf16 %v184_v29, %v182_v28  ;;  %v183_v38 = vld [vmem:[%s1293_s1 + $0x130] sm:$0xff] }
  0x24   : > { %736 = vmatprep.subr.bf16.mxu1 %v735_v9  ;;  %v238_v39 = vld [vmem:[%s1293_s1 + $0x2e8] sm:$0xff]  ;;  %v240_v40 = vld [vmem:[%s1293_s1 + $0x2f8] sm:$0xff]  ;;  %305 = vmatprep.mubr.f32.mxu0 %v143_v36  ;;  %v745_v43 = vpack.c.bf16 %v235_v35, %v233_v34  ;;  %v693_v44 = vpack.c.bf16 %v183_v38, %v181_v30  ;;  %v237_v46 = vld [vmem:[%s1293_s1 + $0x2e0] sm:$0xff]  ;;  %v463_v30 = vlaneseq }
  0x25   : > { %678 = vmatpush1.bf16.msra.mxu0 %v677_v58  ;;  %v186_v41 = vld [vmem:[%s1293_s1 + $0x148] sm:$0xff]  ;;  %v188_v42 = vld [vmem:[%s1293_s1 + $0x158] sm:$0xff]  ;;  %v747_v45 = vpack.c.bf16 %v240_v40, %v238_v39  ;;  %v239_v47 = vld [vmem:[%s1293_s1 + $0x2f0] sm:$0xff] }
  0x26   : > { %680 = vmatprep.subr.bf16.mxu0 %v679_v63  ;;  %v695_v48 = vpack.c.bf16 %v188_v42, %v186_v41  ;;  %v185_v49 = vld [vmem:[%s1293_s1 + $0x140] sm:$0xff]  ;;  %v187_v50 = vld [vmem:[%s1293_s1 + $0x150] sm:$0xff]  ;;  %v190_v51 = vld [vmem:[%s1293_s1 + $0x168] sm:$0xff]  ;;  %v749_v53 = vpack.c.bf16 %v239_v47, %v237_v46 }
  0x27   : > { %738 = vmatpush1.bf16.msra.mxu1 %v737_v18  ;;  %v192_v52 = vld [vmem:[%s1293_s1 + $0x178] sm:$0xff]  ;;  %v697_v54 = vpack.c.bf16 %v187_v50, %v185_v49  ;;  %v189_v56 = vld [vmem:[%s1293_s1 + $0x160] sm:$0xff]  ;;  %v191_v57 = vld [vmem:[%s1293_s1 + $0x170] sm:$0xff] }
  0x28   : > { %740 = vmatprep.subr.bf16.mxu1 %v739_v21  ;;  %v699_v55 = vpack.c.bf16 %v192_v52, %v190_v51  ;;  %v194_v58 = vld [vmem:[%s1293_s1 + $0x188] sm:$0xff]  ;;  %v196_v59 = vld [vmem:[%s1293_s1 + $0x198] sm:$0xff]  ;;  %v144_v60 = vld [vmem:[%s1128_s8 + $0x10] sm:$0xff]  ;;  %v701_v61 = vpack.c.bf16 %v191_v57, %v189_v56 }
  0x29   : > { %682 = vmatpush1.bf16.msra.mxu0 %v681_v6  ;;  %v703_v62 = vpack.c.bf16 %v196_v59, %v194_v58  ;;  %v193_v63 = vld [vmem:[%s1293_s1 + $0x180] sm:$0xff]  ;;  %v195_v0 = vld [vmem:[%s1293_s1 + $0x190] sm:$0xff]  ;;  %v198_v1 = vld [vmem:[%s1293_s1 + $0x1a8] sm:$0xff] }
  0x2a   : > { %684 = vmatprep.subr.bf16.mxu0 %v683_v12  ;;  %v200_v2 = vld [vmem:[%s1293_s1 + $0x1b8] sm:$0xff]  ;;  %v705_v3 = vpack.c.bf16 %v195_v0, %v193_v63  ;;  %v197_v5 = vld [vmem:[%s1293_s1 + $0x1a0] sm:$0xff]  ;;  %v199_v6 = vld [vmem:[%s1293_s1 + $0x1b0] sm:$0xff] }
  0x2b   : > { %742 = vmatpush1.bf16.msra.mxu1 %v741_v31  ;;  %v707_v4 = vpack.c.bf16 %v200_v2, %v198_v1  ;;  %v202_v8 = vld [vmem:[%s1293_s1 + $0x1c8] sm:$0xff]  ;;  %v204_v9 = vld [vmem:[%s1293_s1 + $0x1d8] sm:$0xff]  ;;  %v709_v10 = vpack.c.bf16 %v199_v6, %v197_v5  ;;  %v201_v12 = vld [vmem:[%s1293_s1 + $0x1c0] sm:$0xff]  ;;  %v464_v31 = vshrl.u32 %v463_v30, 7 }
  0x2c   : > { %744 = vmatprep.subr.bf16.mxu1 %v743_v33  ;;  %v711_v11 = vpack.c.bf16 %v204_v9, %v202_v8  ;;  %v203_v13 = vld [vmem:[%s1293_s1 + $0x1d0] sm:$0xff]  ;;  %v206_v14 = vld [vmem:[%s1293_s1 + $0x1e8] sm:$0xff]  ;;  %v208_v15 = vld [vmem:[%s1293_s1 + $0x1f8] sm:$0xff] }
  0x2d   : > { %686 = vmatpush1.bf16.msra.mxu0 %v685_v19  ;;  %v713_v16 = vpack.c.bf16 %v203_v13, %v201_v12  ;;  %v715_v17 = vpack.c.bf16 %v208_v15, %v206_v14  ;;  %v205_v18 = vld [vmem:[%s1293_s1 + $0x1e0] sm:$0xff]  ;;  %v207_v19 = vld [vmem:[%s1293_s1 + $0x1f0] sm:$0xff] }
  0x2e   : > { %688 = vmatprep.subr.bf16.mxu0 %v687_v24  ;;  %v717_v20 = vpack.c.bf16 %v207_v19, %v205_v18  ;;  %v142_v21 = vld [vmem:[%s1128_s8] sm:$0xff]  ;;  %s134_s8 = sand.u32 1, %s854_s10  }
  0x2f   : > { %746 = vmatpush1.bf16.msra.mxu1 %v745_v43  ;;  %s632_s4 = sshll.u32 %s134_s8, 3  ;;  %s556_s23 = scalar_lea.sflag [#allocation3], %s134_s8 }
  0x30   : > { %748 = vmatprep.subr.bf16.mxu1 %v747_v45  ;;  %s136_s6 = scalar_lea.vmem [#allocation2], %s632_s4 }
  0x31   : > { %690 = vmatpush1.bf16.msra.mxu0 %v689_v32  ;;  %v466_v32 = vand.u32 127, %v463_v30  ;;  %s569_s16 = sshll.u32 %s136_s6, 4  ;;  %s1251_s16 = int_to_ptr.vmem [resolvable:$true] %s569_s16 }
  0x32   : > { %692 = vmatprep.subr.bf16.mxu0 %v691_v37  ;;  %s800_s24 = scalar_lea.vmem %s1251_s16, 128  ;;  %p807_p0 = scmp.lt.s32.totalorder %s1251_s16, %s805_s7 }
  0x33   : > { %750 = vmatpush1.bf16.msra.mxu1 %v749_v53  ;;  %vm467_vm2 = vcmp.le.s32.totalorder %v466_v32, %v464_v31  ;;  %p801_p11 = scmp.ne.s32.totalorder %s1251_s16, %s800_s24  ;;  %p808_p1 = scmp.lt.s32.totalorder %s806_s14, %s800_s24 }
  0x34   : > { %645 = vmatprep.subr.mxu1 %v864_v7 }
  0x35   : > { %694 = vmatpush1.bf16.msra.mxu0 %v693_v44  ;;  %p802_p12 = pnand %p801_p11, %p921_p5  ;;  %p809_p2 = por %p808_p1, %p807_p0 }
  0x36   : > { %696 = vmatprep.subr.bf16.mxu0 %v695_v48  ;;  %377 = vmatmul.mubr.f32.vlgmr.msra.gmra.mrb[0].mxu1 %v144_v60 }
  0x37   : > { %647 = vmatprep.mubr.msk.f32.mxu1 %vm865_vm0, %v864_v7  ;;  %p803_p13 = pneg %p802_p12 }
  0x39   : > { %698 = vmatpush1.bf16.msra.mxu0 %v697_v54  ;;  %p810_p3 = pnand %p809_p2, %p803_p13 }
  0x3a   : > { %700 = vmatprep.subr.bf16.mxu0 %v699_v55 }
  0x3d   : > { %702 = vmatpush1.bf16.msra.mxu0 %v701_v61 }
  0x3e   : > { %704 = vmatprep.subr.bf16.mxu0 %v703_v62 }
  0x41   : > { %706 = vmatpush1.bf16.msra.mxu0 %v705_v3 }
  0x42   : > { %708 = vmatprep.subr.bf16.mxu0 %v707_v4 }
  0x45   : > { %710 = vmatpush1.bf16.msra.mxu0 %v709_v10 }
  0x46   : > { %712 = vmatprep.subr.bf16.mxu0 %v711_v11 }
  0x49   : > { %714 = vmatpush1.bf16.msra.mxu0 %v713_v16 }
  0x4a   : > { %716 = vmatprep.subr.bf16.mxu0 %v715_v17 }
  0x4d   : > { %718 = vmatpush1.bf16.msra.mxu0 %v717_v20 }
  0x50   : > { %306 = vmatmul.mubr.f32.vlgmr.msra.gmra.mrb[0].mxu0 %v142_v21 }
 0x109   : > { %v378_v22 = vpop.f32.mrb[0].mxu1 }
 0x10a   : > { %v380_v23 = vpop.f32.mrb[1].mxu1 }
 0x123   : > { %v307_v24 = vpop.f32.mrb[0].mxu0 }
 0x124   : > { %v379_v25 = vadd.f32 %v378_v22, %v307_v24  ;;  %v309_v26 = vpop.f32.mrb[1].mxu0 }
 0x125   : > { %v381_v27 = vadd.f32 %v380_v23, %v309_v26 }
 0x126   : > { %385 = vrot.lane.b32.xlu0 %v379_v25, %s866_s3  ;;  %v383_v29 = vmul.f32 0.125, %v379_v25 }
 0x198   : > { %v386_v28 = vpop.permute.xlu0 %385 }
 0x199   : > { %646 = vmatpush3.xpose.msk.msra.mxu1 %vm387_vm1, %v386_v28 }
 0x19a   : > { %650 = vmatprep.subr.mxu1 %v864_v7 }
 0x19c   : > { %648 = vmatmul.mubr.msk.f32.vlgmr.msra.gmra.mrb[2].mxu1 %vm387_vm1, %v383_v29 }
 0x19d   : > { %651 = vmatpush3.msra.mxu1 %v381_v27  ;;  %652 = vmatprep.mubr.msk.f32.mxu1 %vm865_vm0, %v864_v7 }
 0x26f   : > { %v459_v33 = vpop.f32.mrb[2].mxu1 }
 0x270   : > { %v468_v34 = vsel %vm467_vm2, %v459_v33, -inf  ;;  %v649_v35 = vpop.f32.mrb[3].mxu1 }
 0x271   : > { %v470_v36 = vsel %vm469_vm3, %v468_v34, -inf }
 0x272   : > { %471 = vmax.xlane.f32.xlu0 %v470_v36 }
 0x2ff   : > { %v472_v37 = vpop.xlane.xlu0 %471 }
 0x300   : > { %v473_v38 = vsub.f32 %v468_v34, %v472_v37 }
 0x302   : > { %v474_v39 = vmul.f32 1.442695, %v473_v38 }
 0x304   : > { %796 = vpow2.f32 %v474_v39 }
 0x30e   : > { %v797_v40 = vpop.eup %796 }
 0x30f   : > { %v476_v7 = vsel %vm469_vm3, %v797_v40, 0.0 }
 0x310   : > { %477 = vadd.xlane.f32.xlu1 %v476_v7 }
 0x39d   : > { %v478_v41 = vpop.xlane.xlu1 %477 }
 0x39e   : > { %798 = vrcp.f32 %v478_v41 }
 0x3a8   : > { %v799_v42 = vpop.eup %798 }
 0x3a9   : > { %v480_v43 = vmul.f32 %v799_v42, %v797_v40 }
 0x3ab   : > { %653 = vmatmul.mubr.msk.f32.vlgmr.msra.gmra.mrb[4].mxu1 %vm469_vm3, %v480_v43 }
 0x47e   : > { %v550_v44 = vpop.f32.mrb[4].mxu1 }
 0x47f   : > { %554 = vst.msk [vmem:[%s136_s6] sm:$0xff] %vm387_vm1, %v550_v44  ;;  %v654_v45 = vpop.f32.mrb[5].mxu1 }
 0x480   : > { %813 = shalt.err (!%p810_p3)
}
 0x481   : > { %s814_s25 = scalar_lea.hbm %s1249_s22, 128  ;;  %s818_s28 = scalar_lea.hbm %s1294_s2, 256 }
 0x482   : > { %p815_p4 = scmp.ne.s32.totalorder %s1249_s22, %s814_s25  ;;  %p819_p9 = scmp.lt.u32.totalorder %s1249_s22, %s1294_s2 }
 0x483   : > { %p820_p10 = scmp.lt.u32.totalorder %s818_s28, %s814_s25  ;;  %p822_p12 = scmp.lt.u32.totalorder %s814_s25, %s1249_s22 }
 0x484   : > { %p816_p7 = pnand %p815_p4, %p921_p5 }
 0x485   : > { %p821_p11 = por %p820_p10, %p819_p9 }
 0x486   : > { %p817_p8 = pneg %p816_p7 }
 0x487   : > { %p823_p13 = por %p822_p12, %p821_p11 }
 0x489   : > { %p824_p0 = pnand %p823_p13, %p817_p8 }
 0x48b   : > { %827 = shalt.err (!%p824_p0)
}
 0x48c   : > { %754 = dma.vmem_to_hbm [thread:$0]  (%p921_p5), %s1251_s16, 128, %s1249_s22, %s556_s23  }
 0x48d PF: > { %p760_p1 = scmp.ge.s32.totalorder %s862_s12, 2  ;;  %s581_s3 = sand.u32 1, %s850_s9  }
 0x48e   : > { %s582_s8 = scalar_lea.sflag [#allocation3], %s581_s3 }
 0x48f   : > { %p757_p2 = pnand %p760_p1, %p925_p6 }
 0x491   : > { %845 = dma.done.wait (!%p757_p2), %s582_s8, 128  }
 0x492   : > { %847 = vsyncadd (!%p757_p2), %s582_s8, 4294967168  ;;  %p12_p3 = scmp.ge.s32.totalorder %s908_s15, 4   ;;  %s1297_s9 = smov %s854_s10 }
 0x493   : > { %s1298_s10 = smov %s858_s11  ;;  %s1299_s11 = smov %s919_s18 }
 0x494   : > { %s1300_s12 = smov %s908_s15  ;;  %14 = sbr.rel (!%p12_p3) target bundleno = 3 (0x3), region = 63 }
 0x49b   :  { %587 = vsyncpa [#allocation3], 1 }
 0x49c   :  { %589 = vsyncpa [#allocation3 + $0x1], 1 }

</bundles_post_ra>
